<compile_context>
chip_gen: v6e
topology: v6e:2x2x1
jax: 0.10.0
libtpu: 0.0.40
codegen_flags: <defaults>
</compile_context>

<pallas_src>
import functools
import math

import jax
import jax.numpy as jnp
from jax.experimental import pallas as pl
from jax.experimental.pallas import tpu as pltpu


def _round_up(v, m):
    return ((v + m - 1) // m) * m


def _cdiv(a, b):
    return -(-a // b)


def _physical_vmem_bytes():
    """Per-TensorCore physical VMEM, with a conservative (v7x) fallback."""
    try:
        info = pltpu.get_tpu_info()
        v = getattr(info, "vmem_capacity_bytes", None)
        if v:
            return int(v)
    except Exception:
        pass
    return 64 * 1024 * 1024


def _balanced_tile(extent, max_tile, align):
    """Largest tile <= max_tile that splits `extent` with minimal padding."""
    ext = _round_up(max(extent, 1), align)
    if ext <= max_tile:
        return ext
    n = _cdiv(extent, max_tile)
    return min(_round_up(max_tile, align), _round_up(_cdiv(extent, n), align))


def _normed_linear_kernel(eta_ref, x_ref, wt_ref, o_ref, w_inv_ref, *, mxu_dtype):
    # eta_ref   : SMEM (1,) float32     -- scalar scale (1.0 when scale=False)
    # x_ref     : VMEM (tm, K)          -- batch tile (raw, un-normalized)
    # wt_ref    : VMEM (K, tn)          -- pre-transposed weight tile (resident over batch steps)
    # o_ref     : VMEM (tm, tn)         -- output tile
    # w_inv_ref : VMEM (1, tn) float32  -- eta / ||w_row|| scratch (amortized per out-tile)
    eps_sq = jnp.float32(1e-24)  # eps**2 for F.normalize eps = 1e-12

    # Inverse column norms (== per-output-row weight norms), computed once per
    # out-tile.  The batch axis is innermost ("arbitrary"), so every batch
    # step reuses this tiny (1, tn) vector instead of a (tn, K) normalized-W
    # copy; eta is folded in here so the epilogue is a single column scale.
    @pl.when(pl.program_id(1) == 0)
    def _():
        w = wt_ref[...].astype(jnp.float32)
        w_inv_ref[...] = eta_ref[0] * jax.lax.rsqrt(
            jnp.maximum(jnp.sum(w * w, axis=0, keepdims=True), eps_sq)
        )

    # Per-row inverse x norm (EUP rsqrt; free slot under MXU time).
    x_f32 = x_ref[...].astype(jnp.float32)
    x_inv = jax.lax.rsqrt(
        jnp.maximum(jnp.sum(x_f32 * x_f32, axis=1, keepdims=True), eps_sq)
    )

    # Canonical (tm, K) @ (K, tn) MXU contraction with f32 accumulation; the
    # operands feed the MXU untouched and all scaling happens on the f32
    # accumulator (slightly more accurate, negligible VPU cost).
    out = jnp.dot(
        x_ref[...].astype(mxu_dtype),
        wt_ref[...].astype(mxu_dtype),
        preferred_element_type=jnp.float32,
    )
    o_ref[...] = (out * x_inv * w_inv_ref[...]).astype(o_ref.dtype)


def normed_linear(x, weight, eta=None, *, tm_max=256, tn_max=None,
                  use_bf16_matmul=False):
    """Pallas implementation of NormedLinear.forward.

    x:      (B, in_features)
    weight: (out_features, in_features)
    eta:    scalar (or None when scale=False)
    """
    B, K = x.shape
    O, Kw = weight.shape
    assert K == Kw
    out_dtype = x.dtype

    in_b = jnp.dtype(x.dtype).itemsize
    w_b = jnp.dtype(weight.dtype).itemsize
    out_b = jnp.dtype(out_dtype).itemsize

    # Generation-aware VMEM budgets: ~5/8 of physical for the tile estimator,
    # ~4/5 (capped) for the scoped limit, leaving compiler-scratch headroom.
    phys_vmem = _physical_vmem_bytes()
    budget = max(24 * 1024 * 1024, (phys_vmem * 5) // 8)
    vmem_limit = int(min((phys_vmem * 4) // 5, phys_vmem - 8 * 1024 * 1024))

    if tn_max is None:
        tn_max = 1024 if phys_vmem >= 96 * 1024 * 1024 else 512

    # bf16 packs 16 rows per vreg; keep tm a multiple of 16 for 2-byte dtypes.
    sub_align = 16 if in_b == 2 else 8

    # Balanced tiles: avoid ~2x padding waste when B/O is just above the cap.
    tm = _balanced_tile(B, tm_max, sub_align)
    tn = _balanced_tile(O, tn_max, 128)

    # Megacore balance (v7x: 2 TCs share the "parallel" out axis): split into
    # >= 2 out-tiles when it costs no extra padding.
    o_pad0 = _round_up(O, tn)
    if o_pad0 // tn < 2 and o_pad0 >= 256:
        tn_half = _round_up(_cdiv(o_pad0, 2), 128)
        if _round_up(O, tn_half) <= o_pad0:
            tn = tn_half

    # Double-buffered working-set estimator (the big (tn, K) scratch is gone;
    # only a (1, tn) f32 inverse-norm vector remains).
    def _est(tm_, tn_):
        return (2 * tm_ * K * in_b        # x tiles
                + 2 * K * tn_ * w_b       # W^T tiles
                + 2 * tm_ * tn_ * out_b   # out tiles
                + tn_ * 4)                # inverse-norm scratch

    # Shrink tm first (doesn't change total HBM traffic), tn last (tn controls
    # the x re-read factor O_pad/tn, the bandwidth-critical dimension).
    while _est(tm, tn) > budget and tm > 128:
        tm = max(128, _round_up(tm // 2, sub_align))
    while _est(tm, tn) > budget and tn > 128:
        tn = max(128, _round_up(tn // 2, 128))
    while _est(tm, tn) > budget and tm > sub_align:
        tm = max(sub_align, _round_up(tm // 2, sub_align))
    # TODO(synk): if in_features is so large that even minimal tiles blow the
    # VMEM budget, add a K grid axis: precompute per-row inverse norms in a
    # tiny prepass and accumulate partial dots in an f32 VMEM scratch (row
    # norms need the full K, so they can't be computed per K-chunk in-kernel).

    B_pad = _round_up(B, tm)
    O_pad = _round_up(O, tn)

    x_p = x if B_pad == B else jnp.pad(x, ((0, B_pad - B), (0, 0)))
    w_p = weight if O_pad == O else jnp.pad(weight, ((0, O_pad - O), (0, 0)))
    # Transpose W once in the wrapper (single XLA pass over W) so the kernel
    # runs a canonical MXU contraction with no per-step in-kernel transpose.
    wt_p = w_p.T  # (K, O_pad)

    eta_arr = jnp.asarray([1.0 if eta is None else eta], dtype=jnp.float32)

    n_out_tiles = O_pad // tn
    n_b_tiles = B_pad // tm
    grid = (n_out_tiles, n_b_tiles)  # out tiles outer, batch tiles inner

    mxu_dtype = (jnp.bfloat16 if use_bf16_matmul
                 else jnp.promote_types(x.dtype, weight.dtype))

    cost = pl.CostEstimate(
        flops=2 * B_pad * O_pad * K,
        transcendentals=B_pad * n_out_tiles + O_pad,
        bytes_accessed=(B_pad * K * in_b * n_out_tiles   # x re-read per out-tile
                        + O_pad * K * w_b                # W read once
                        + B_pad * O_pad * out_b),        # output written once
    )

    kernel = functools.partial(_normed_linear_kernel, mxu_dtype=mxu_dtype)

    # TODO(synk): sweep pipeline_mode=pl.Buffered(3) on the x-tile spec if
    # xprof shows exposed W-tile DMA at out-tile boundaries (small B_pad/tm).
    out = pl.pallas_call(
        kernel,
        out_shape=jax.ShapeDtypeStruct((B_pad, O_pad), out_dtype),
        grid_spec=pltpu.PrefetchScalarGridSpec(
            num_scalar_prefetch=0,
            grid=grid,
            in_specs=[
                pl.BlockSpec(memory_space=pltpu.MemorySpace.SMEM),  # eta (scalar)
                pl.BlockSpec((tm, K), lambda j, i: (i, 0)),         # x tile
                pl.BlockSpec((K, tn), lambda j, i: (0, j)),         # W^T tile (resident over i)
            ],
            out_specs=pl.BlockSpec((tm, tn), lambda j, i: (i, j)),
            scratch_shapes=[pltpu.VMEM((1, tn), jnp.float32)],      # eta / ||w||
        ),
        compiler_params=pltpu.CompilerParams(
            dimension_semantics=("parallel", "arbitrary"),
            vmem_limit_bytes=vmem_limit,
        ),
        cost_estimate=cost,
    )(eta_arr, x_p, wt_p)

    return out[:B, :O]


def init_normed_linear_params(key, in_features, out_features, scale=True):
    """Deterministic parameter init matching NormedLinear.reset_parameters."""
    stdv = 1.0 / math.sqrt(in_features)
    weight = jax.random.uniform(
        key, (out_features, in_features), dtype=jnp.float32,
        minval=-stdv, maxval=stdv,
    )
    eta = jnp.float32(1.0) if scale else None
    return weight, eta


def _reference(x, weight, eta):
    eps = 1e-12
    xn = x / jnp.maximum(jnp.linalg.norm(x, axis=1, keepdims=True), eps)
    wn = weight / jnp.maximum(jnp.linalg.norm(weight, axis=1, keepdims=True), eps)
    out = xn @ wn.T
    if eta is not None:
        out = eta * out
    return out


if __name__ == "__main__":
    key = jax.random.PRNGKey(0)
    k_x, k_w = jax.random.split(key)

    batch = 8
    in_features = 32
    out_features = 16

    x = jax.random.normal(k_x, (batch, in_features), dtype=jnp.float32)
    weight, eta = init_normed_linear_params(k_w, in_features, out_features, scale=True)

    out = jax.block_until_ready(normed_linear(x, weight, eta))

    ref = _reference(x, weight, eta)
    assert out.shape == (batch, out_features)
    err = float(jnp.max(jnp.abs(out - ref)))
    assert err < 1e-4, f"max abs err = {err}"

    print("KERNEL_OK")
</pallas_src>

<mosaic_0001>
module attributes {stable_mosaic.version = 11 : i64} {
  func.func @_normed_linear_kernel(%arg0: i32, %arg1: i32, %arg2: memref<1xf32, #tpu.memory_space<smem>>, %arg3: memref<8x32xf32, #tpu.memory_space<vmem>>, %arg4: memref<32x128xf32, #tpu.memory_space<vmem>>, %arg5: memref<8x128xf32, #tpu.memory_space<vmem>>, %arg6: memref<1x128xf32, #tpu.memory_space<vmem>>) attributes {dimension_semantics = [#tpu.dimension_semantics<parallel>, #tpu.dimension_semantics<arbitrary>], iteration_bounds = array<i64: 1, 1>, scalar_prefetch = 0 : i64, scratch_operands = 1 : i64, tpu.core_type = #tpu.core_type<tc>, window_params = [{transform_indices = @transform_0, window_bounds = array<i64: 1>}, {transform_indices = @transform_1, window_bounds = array<i64: 8, 32>}, {transform_indices = @transform_2, window_bounds = array<i64: 32, 128>}, {transform_indices = @transform_3, window_bounds = array<i64: 8, 128>}]} {
    %c0_i32 = arith.constant 0 : i32
    %0 = arith.cmpi eq, %arg1, %c0_i32 : i32
    %1 = arith.extui %0 : i1 to i32
    %cst = arith.constant 1.000000e-24 : f32
    %c0_i32_0 = arith.constant 0 : i32
    %2 = arith.cmpi ne, %1, %c0_i32_0 : i32
    scf.if %2 {
      %c0_13 = arith.constant 0 : index
      %c0_14 = arith.constant 0 : index
      %19 = vector.load %arg4[%c0_13, %c0_14] : memref<32x128xf32, #tpu.memory_space<vmem>>, vector<32x128xf32>
      %c0_15 = arith.constant 0 : index
      %20 = memref.load %arg2[%c0_15] : memref<1xf32, #tpu.memory_space<smem>>
      %21 = arith.mulf %19, %19 : vector<32x128xf32>
      %cst_16 = arith.constant dense<0.000000e+00> : vector<128xf32>
      %22 = vector.multi_reduction <add>, %21, %cst_16 [0] : vector<32x128xf32> to vector<128xf32>
      %23 = vector.shape_cast %22 : vector<128xf32> to vector<1x128xf32>
      %24 = vector.broadcast %cst : f32 to vector<1x128xf32>
      %25 = arith.maximumf %23, %24 : vector<1x128xf32>
      %26 = math.rsqrt %25 : vector<1x128xf32>
      %27 = vector.broadcast %20 : f32 to vector<1x128xf32>
      %28 = arith.mulf %27, %26 : vector<1x128xf32>
      %c0_17 = arith.constant 0 : index
      %c0_18 = arith.constant 0 : index
      %29 = vector.load %arg6[%c0_17, %c0_18] : memref<1x128xf32, #tpu.memory_space<vmem>>, vector<1x128xf32>
      tpu.vector_store %arg6[%c0_17, %c0_18], %28 {strides = array<i32>} : memref<1x128xf32, #tpu.memory_space<vmem>>, vector<1x128xf32>,
    } else {
    }
    %c0 = arith.constant 0 : index
    %c0_1 = arith.constant 0 : index
    %3 = vector.load %arg3[%c0, %c0_1] : memref<8x32xf32, #tpu.memory_space<vmem>>, vector<8x32xf32>
    %4 = arith.mulf %3, %3 : vector<8x32xf32>
    %cst_2 = arith.constant dense<0.000000e+00> : vector<8xf32>
    %5 = vector.multi_reduction <add>, %4, %cst_2 [1] : vector<8x32xf32> to vector<8xf32>
    %6 = vector.shape_cast %5 : vector<8xf32> to vector<8x1xf32>
    %cst_3 = arith.constant 1.000000e-24 : f32
    %7 = vector.broadcast %cst_3 : f32 to vector<8x1xf32>
    %8 = arith.maximumf %6, %7 : vector<8x1xf32>
    %9 = math.rsqrt %8 : vector<8x1xf32>
    %c0_4 = arith.constant 0 : index
    %c0_5 = arith.constant 0 : index
    %10 = vector.load %arg3[%c0_4, %c0_5] : memref<8x32xf32, #tpu.memory_space<vmem>>, vector<8x32xf32>
    %c0_6 = arith.constant 0 : index
    %c0_7 = arith.constant 0 : index
    %11 = vector.load %arg4[%c0_6, %c0_7] : memref<32x128xf32, #tpu.memory_space<vmem>>, vector<32x128xf32>
    %cst_8 = arith.constant dense<0.000000e+00> : vector<8x128xf32>
    %12 = tpu.matmul %10, %11, %cst_8 {dimension_numbers = #tpu.dot_dimension_numbers<[1], [0], [0], [1], [0, 0, 1, 1], [], []>} : vector<8x32xf32>, vector<32x128xf32>, vector<8x128xf32> -> vector<8x128xf32>
    %13 = vector.broadcast %9 : vector<8x1xf32> to vector<8x128xf32>
    %14 = arith.mulf %12, %13 : vector<8x128xf32>
    %c0_9 = arith.constant 0 : index
    %c0_10 = arith.constant 0 : index
    %15 = vector.load %arg6[%c0_9, %c0_10] : memref<1x128xf32, #tpu.memory_space<vmem>>, vector<1x128xf32>
    %16 = vector.broadcast %15 : vector<1x128xf32> to vector<8x128xf32>
    %17 = arith.mulf %14, %16 : vector<8x128xf32>
    %c0_11 = arith.constant 0 : index
    %c0_12 = arith.constant 0 : index
    %18 = vector.load %arg5[%c0_11, %c0_12] : memref<8x128xf32, #tpu.memory_space<vmem>>, vector<8x128xf32>
    tpu.vector_store %arg5[%c0_11, %c0_12], %17 {strides = array<i32>} : memref<8x128xf32, #tpu.memory_space<vmem>>, vector<8x128xf32>,
    return
  }
  func.func @transform_0(%arg0: i32, %arg1: i32) -> i32 {
    %c0_i32 = arith.constant 0 : i32
    %c0_i32_0 = arith.constant 0 : i32
    return %c0_i32 : i32
  }
  func.func @transform_1(%arg0: i32, %arg1: i32) -> (i32, i32) {
    %c0_i32 = arith.constant 0 : i32
    %c0_i32_0 = arith.constant 0 : i32
    return %arg1, %c0_i32 : i32, i32
  }
  func.func @transform_2(%arg0: i32, %arg1: i32) -> (i32, i32) {
    %c0_i32 = arith.constant 0 : i32
    %c0_i32_0 = arith.constant 0 : i32
    return %c0_i32, %arg0 : i32, i32
  }
  func.func @transform_3(%arg0: i32, %arg1: i32) -> (i32, i32) {
    %c0_i32 = arith.constant 0 : i32
    return %arg1, %arg0 : i32, i32
  }
}

</mosaic_0001>

<bundles_post_ra>
// kernel: tpu_custom_call.1
= control target key start
LH: loop header
LB: loop body
LE: loop exit
PB: predicated region body
PF: predicated region fallthrough
CT: control target
= control target key end

     0   :  { %9 = vsyncpa [#allocation5], 0  ;;  %s314_s0 = inlined_call_operand.<no memory space> [shape: f32[1], index: 0, kind: input, shape index: {}]   ;;  %s315_s1 = inlined_call_operand.hbm [shape: f32[8,32], index: 1, kind: input, shape index: {}]   ;;  %s316_s2 = inlined_call_operand.hbm [shape: f32[32,128], index: 2, kind: input, shape index: {}]   ;;  %s317_s3 = inlined_call_operand.hbm [shape: f32[8,128], index: 3, kind: output, shape index: {}]  }
   0x1   :  { %10 = vsyncpa [#allocation8], 0 }
   0x2   :  { %11 = vsyncpa [#allocation6], 0  ;;  %s275_s12 = smov [#allocation4]   ;;  %s276_s14 = smov [#allocation7]  }
   0x3   :  { %s20_s13 = sshll.u32 %s275_s12, 4  ;;  %s29_s15 = sshll.u32 %s276_s14, 4  ;;  %s21_s13 = int_to_ptr.vmem [resolvable:$true] %s20_s13  ;;  %s30_s15 = int_to_ptr.vmem [resolvable:$true] %s29_s15 }
   0x4   :  { %s217_s16 = scalar_lea.vmem %s21_s13, 128  ;;  %p222_p1 = scmp.lt.s32.totalorder %s21_s13, %s21_s13 }
   0x5   :  { %p218_p0 = scmp.ne.s32.totalorder %s21_s13, %s217_s16  ;;  %p223_p2 = scmp.lt.s32.totalorder %s217_s16, %s217_s16 }
   0x7   :  { %p224_p3 = por %p223_p2, %p222_p1 }
   0x9   :  { %p225_p4 = pnand %p224_p3, %p218_p0 }
   0xb   :  { %228 = shalt.err (!%p225_p4)
}
   0xc   :  { %23 = dma.hbm_to_vmem [thread:$0]  %s315_s1, 128, %s21_s13, [#allocation5]  }
   0xd   :  { %s237_s19 = scalar_lea.vmem %s30_s15, 512  ;;  %p242_p6 = scmp.lt.s32.totalorder %s30_s15, %s30_s15 }
   0xe   :  { %p238_p5 = scmp.ne.s32.totalorder %s30_s15, %s237_s19  ;;  %p243_p7 = scmp.lt.s32.totalorder %s237_s19, %s237_s19 }
  0x10   :  { %p244_p8 = por %p243_p7, %p242_p6 }
  0x12   :  { %p245_p9 = pnand %p244_p8, %p238_p5 }
  0x14   :  { %248 = shalt.err (!%p245_p9)
}
  0x15   :  { %s277_s20 = smov 128   ;;  %s278_s21 = smov 8  }
  0x16   :  { %35 = dma.hbm_to_vmem [thread:$0]  %s316_s2, 512, %s30_s15, [#allocation8], %s277_s20, %s277_s20, %s278_s21  }
  0x17   :  { %269 = dma.done.wait [#allocation5], 128  }
  0x18   :  { %270 = vsyncadd [#allocation5], 4294967168 }
  0x19   :  { %271 = dma.done.wait [#allocation8], 512  }
  0x1a   :  { %272 = vsyncadd [#allocation8], 4294966784  ;;  %v279_v0 = vmov 0.0   ;;  %vm280_vm0 = vmmov 0   ;;  %v80_v1 = vld [vmem:[#allocation7 + $0x18] sm:$0xff]  ;;  %v79_v2 = vld [vmem:[#allocation7 + $0x10] sm:$0xff]  ;;  %v66_v22 = vstv %s314_s0 }
  0x1b   :  { %187 = vmatprep.subr.mxu0 %v279_v0  ;;  %195 = vmatprep.mubr.msk.f32.mxu0 %vm280_vm0, %v279_v0  ;;  %v69_v3 = vld [vmem:[#allocation4] sm:$0xff]  ;;  %v78_v4 = vld [vmem:[#allocation7 + $0x8] sm:$0xff]  ;;  %vm71_vm1 = vcmask 261120   ;;  %v77_v6 = vld [vmem:[#allocation7] sm:$0xff]  ;;  %v53_v10 = vmul.f32 %v79_v2, %v79_v2  ;;  %v54_v11 = vmul.f32 %v80_v1, %v80_v1  ;;  %s281_s24 = smov [#allocation9]  }
  0x1c   :  { %188 = vmatpush3.msra.mxu0 %v80_v1  ;;  %v70_v5 = vmul.f32 %v69_v3, %v69_v3  ;;  %v51_v8 = vmul.f32 %v77_v6, %v77_v6  ;;  %v52_v9 = vmul.f32 %v78_v4, %v78_v4  ;;  %s170_s25 = sshll.u32 %s281_s24, 4  ;;  %s171_s25 = int_to_ptr.vmem [resolvable:$true] %s170_s25 }
  0x1d   :  { %189 = vmatprep.subr.mxu0 %v279_v0  ;;  %s249_s26 = scalar_lea.vmem %s171_s25, 128  ;;  %p254_p11 = scmp.lt.s32.totalorder %s171_s25, %s171_s25 }
  0x1e   :  { %190 = vmatpush3.msra.mxu0 %v79_v2  ;;  %v72_v7 = vsel %vm71_vm1, %v70_v5, 0.0  ;;  %v55_v12 = vadd.f32 %v52_v9, %v51_v8  ;;  %p250_p10 = scmp.ne.s32.totalorder %s171_s25, %s249_s26  ;;  %p255_p12 = scmp.lt.s32.totalorder %s249_s26, %s249_s26 }
  0x1f   :  { %191 = vmatprep.subr.mxu0 %v279_v0  ;;  %73 = vadd.xlane.f32.xlu0 %v72_v7 }
  0x20   :  { %192 = vmatpush3.msra.mxu0 %v78_v4  ;;  %v56_v13 = vadd.f32 %v55_v12, %v53_v10  ;;  %p256_p13 = por %p255_p12, %p254_p11 }
  0x21   :  { %193 = vmatprep.subr.mxu0 %v279_v0 }
  0x22   :  { %194 = vmatpush3.msra.mxu0 %v77_v6  ;;  %v57_v14 = vadd.f32 %v56_v13, %v54_v11  ;;  %p257_p0 = pnand %p256_p13, %p250_p10 }
  0x23   :  { %196 = vmatmul.mubr.msk.f32.vlgmr.msra.gmra.mxu0 %vm71_vm1, %v69_v3 }
  0x24   :  { %v58_v15 = vrot.slane %v57_v14, 4 }
  0x26   :  { %v59_v16 = vadd.f32 %v58_v15, %v57_v14 }
  0x28   :  { %v60_v17 = vrot.slane %v59_v16, 2 }
  0x2a   :  { %v61_v18 = vadd.f32 %v60_v17, %v59_v16 }
  0x2c   :  { %v62_v19 = vrot.slane %v61_v18, 1 }
  0x2e   :  { %v63_v20 = vadd.f32 %v62_v19, %v61_v18 }
  0x30   :  { %v64_v21 = vmax.f32 %v63_v20, 1e-24 }
  0x32   :  { %205 = vrsqrt.f32 %v64_v21 }
  0x3f   :  { %v206_v23 = vpop.eup %205 }
  0x40   :  { %v67_v24 = vmul.f32 %v206_v23, %v66_v22 }
  0x42   :  { %68 = vst [vmem:[#allocation2] sm:$0x1] %v67_v24 }
  0x49   :  { %v181_v29 = vld [vmem:[#allocation2] ss:$0 sm:$0xff] }
  0xa8   :  { %v74_v25 = vpop.xlane.xlu0 %73 }
  0xa9   :  { %v75_v26 = vmax.f32 %v74_v25, 1e-24 }
  0xab   :  { %207 = vrsqrt.f32 %v75_v26 }
  0xb8   :  { %v208_v27 = vpop.eup %207 }
  0xe3   :  { %v150_v28 = vpop.f32.mrf.mxu0 }
  0xe4   :  { %v154_v30 = vmul.f32 %v208_v27, %v150_v28 }
  0xe5   :  { %v197_v31 = vpop.f32.mrf.mxu0 }
  0xe6   :  { %v162_v32 = vmul.f32 %v181_v29, %v154_v30 }
  0xe8   :  { %163 = vst [vmem:[#allocation9] sm:$0xff] %v162_v32 }
  0xe9   :  { %260 = shalt.err (!%p257_p0)
}
  0xea   :  { %173 = dma.vmem_to_hbm [thread:$0]  %s171_s25, 128, %s317_s3, [#allocation6]  }
  0xeb   :  { %273 = dma.done.wait [#allocation6], 128  }
  0xec   :  { %274 = vsyncadd [#allocation6], 4294967168 }
  0xed   :  { %177 = vsyncpa [#allocation5], 1 }
  0xee   :  { %178 = vsyncpa [#allocation8], 1 }
  0xef   :  { %179 = vsyncpa [#allocation6], 1 }

</bundles_post_ra>
